<compile_context>
chip_gen: v7x
topology: tpu7x:2x2x1
jax: 0.10.0
libtpu: 0.0.40
codegen_flags: <defaults>
</compile_context>

<pallas_src>
import jax
import jax.numpy as jnp
from jax.experimental import pallas as pl
from jax.experimental.pallas import tpu as pltpu


def _sap_kernel(w_ref, x_ref, m_ref, o_ref):
    # w_ref : VMEM (1, H)     -- Linear weight (out_features=1), in x's dtype
    # x_ref : VMEM (BN, T, H) -- BN rows of batch_rep
    # m_ref : VMEM (BN, T)    -- additive attention mask (original dtype)
    # o_ref : VMEM (BN, H)    -- pooled output slab (lane-dense)
    x = x_ref[...]                                   # (BN, T, H), input dtype
    w = w_ref[...]                                   # (1, H) -> broadcasts over (BN, T, H)

    # att_logits[b, t] = <x[b, t, :], w>  (VPU multiply + lane reduce, f32 accumulation;
    # bias omitted: softmax is shift-invariant so it is a mathematical no-op)
    logits = jnp.sum(x * w, axis=-1, dtype=jnp.float32)           # (BN, T)
    logits = logits + m_ref[...].astype(jnp.float32)

    # Numerically stable softmax over T. Exact divide (not approx reciprocal)
    # so f32 inputs match the reference to ~1e-6; the divide only touches the
    # small (BN, T) slab so it is far off the critical (HBM) path.
    m_max = jnp.max(logits, axis=-1, keepdims=True)
    e = jnp.exp(logits - m_max)
    att_w = e / jnp.sum(e, axis=-1, keepdims=True)                # (BN, T) f32

    # utter_rep[b, :] = sum_t att_w[b, t] * x[b, t, :]
    # Batched (1, T) @ (T, H) on the MXU: operands stay in x's dtype,
    # accumulation in f32 via preferred_element_type.
    att_w3 = att_w[:, None, :].astype(x.dtype)                    # (BN, 1, T)
    out = jnp.einsum("bqt,bth->bqh", att_w3, x,
                     preferred_element_type=jnp.float32)          # (BN, 1, H)
    o_ref[...] = out[:, 0, :].astype(o_ref.dtype)


def _vmem_capacity_bytes():
    """Per-core VMEM capacity; conservative 64 MiB fallback (v7x-sized)."""
    try:
        return int(pltpu.get_tpu_info().vmem_capacity_bytes)
    except Exception:
        return 64 * 1024 * 1024


def _choose_block_n(N, T, H, x_it, m_it, budget):
    """Batch rows per grid step, sized to fit `budget` bytes of VMEM.

    Accounts for the double-buffered pipelined tiles AND the single-buffered
    in-kernel temporaries (x*w product + possible f32 reduce copy).
    """
    per_row = (
        2 * (T * H * x_it + T * m_it + H * x_it)   # double-buffered x / mask / out
        + T * H * (x_it + 4)                       # x*w product (+ f32 reduce temp)
        + 6 * T * 4 + 2 * H * 4                    # logits/exp/att_w + f32 out row
    )
    bn = max(1, budget // per_row)

    if bn >= N:
        # Whole batch fits in one step. For N >= 16 split into >= 2 blocks of
        # multiple-of-8 rows so both v7x TensorCores (megacore sharding of the
        # "parallel" axis) get work; no effect on 1-TC v5e/v6e.
        if N >= 16:
            half = (N // 2) // 8 * 8
            if half >= 8:
                return half
        return N

    # Multiple grid steps: rows-per-step must be a multiple of 8 so the
    # (bn, T) mask and (bn, H) output blocks stay sublane-dense.
    bn = max(8, bn // 8 * 8)
    return min(bn, max(8, N // 8 * 8))


def self_attention_pooling(batch_rep, att_mask, weight, bias=None):
    """batch_rep: (N, T, H), att_mask: (N, T), weight: (1, H), bias: (1,) -> (N, H).

    The Linear bias adds the same scalar to every logit; softmax is
    shift-invariant, so the bias cannot change the output and is not plumbed
    into the kernel.
    """
    del bias
    N, T, H = batch_rep.shape
    x_it = jnp.dtype(batch_rep.dtype).itemsize
    m_it = jnp.dtype(att_mask.dtype).itemsize

    capacity = _vmem_capacity_bytes()
    budget = capacity // 2                      # tiles + temps stay well inside the limit
    vmem_limit = int(min(capacity, max(32 * 1024 * 1024, capacity * 3 // 4)))

    bn = _choose_block_n(N, T, H, x_it, m_it, budget)
    grid = (pl.cdiv(N, bn),)                    # ragged last block handled by Pallas
                                                # boundary masking -- no jnp.pad of x.

    weight = weight.astype(batch_rep.dtype)     # no per-step in-kernel cast

    out = pl.pallas_call(
        _sap_kernel,
        out_shape=jax.ShapeDtypeStruct((N, H), batch_rep.dtype),
        grid_spec=pltpu.PrefetchScalarGridSpec(
            num_scalar_prefetch=0,
            grid=grid,
            in_specs=[
                pl.BlockSpec((1, H), lambda n: (0, 0)),         # weight (resident)
                pl.BlockSpec((bn, T, H), lambda n: (n, 0, 0)),  # batch_rep slab
                pl.BlockSpec((bn, T), lambda n: (n, 0)),        # additive mask slab
            ],
            out_specs=pl.BlockSpec((bn, H), lambda n: (n, 0)),  # dense (BN, H) store
        ),
        compiler_params=pltpu.CompilerParams(
            dimension_semantics=("parallel",),
            vmem_limit_bytes=vmem_limit,
        ),
    )(weight, batch_rep, att_mask)
    return out


def _reference(batch_rep, att_mask, weight, bias):
    logits = jnp.einsum("nth,oh->nt", batch_rep, weight) + bias[0]
    logits = att_mask + logits
    att_w = jax.nn.softmax(logits, axis=-1)[..., None]
    return jnp.sum(batch_rep * att_w, axis=1)


if __name__ == "__main__":
    N, T, H = 2, 8, 32
    key = jax.random.PRNGKey(0)
    k1, k2, k3, k4 = jax.random.split(key, 4)

    batch_rep = jax.random.normal(k1, (N, T, H), dtype=jnp.float32)
    # mask: 0 for valid frames, large negative for padded frames
    att_mask = jnp.where(jax.random.uniform(k2, (N, T)) < 0.8, 0.0, -1e4).astype(jnp.float32)
    # Deterministic "Linear(H, 1)" parameters
    weight = jax.random.normal(k3, (1, H), dtype=jnp.float32) * 0.1
    bias = jax.random.normal(k4, (1,), dtype=jnp.float32) * 0.1

    out = self_attention_pooling(batch_rep, att_mask, weight, bias)
    out = jax.block_until_ready(out)

    ref = _reference(batch_rep, att_mask, weight, bias)
    assert out.shape == (N, H)
    assert jnp.allclose(out, ref, atol=1e-5, rtol=1e-5), "mismatch vs reference"

    print("KERNEL_OK")
</pallas_src>

<mosaic_0001>
module attributes {stable_mosaic.version = 11 : i64} {
  func.func @_sap_kernel(%arg0: i32, %arg1: memref<1x32xf32, #tpu.memory_space<vmem>>, %arg2: memref<2x8x32xf32, #tpu.memory_space<vmem>>, %arg3: memref<2x8xf32, #tpu.memory_space<vmem>>, %arg4: memref<2x32xf32, #tpu.memory_space<vmem>>) attributes {dimension_semantics = [#tpu.dimension_semantics<parallel>], iteration_bounds = array<i64: 1>, scalar_prefetch = 0 : i64, scratch_operands = 0 : i64, tpu.core_type = #tpu.core_type<tc>, window_params = [{pipeline_mode = #tpu.pipeline_mode<synchronous>, transform_indices = @transform_0, window_bounds = array<i64: 1, 32>}, {transform_indices = @transform_1, window_bounds = array<i64: 2, 8, 32>}, {transform_indices = @transform_2, window_bounds = array<i64: 2, 8>}, {transform_indices = @transform_3, window_bounds = array<i64: 2, 32>}]} {
    %c0 = arith.constant 0 : index
    %c0_0 = arith.constant 0 : index
    %c0_1 = arith.constant 0 : index
    %0 = vector.load %arg2[%c0, %c0_0, %c0_1] : memref<2x8x32xf32, #tpu.memory_space<vmem>>, vector<2x8x32xf32>
    %c0_2 = arith.constant 0 : index
    %c0_3 = arith.constant 0 : index
    %1 = vector.load %arg1[%c0_2, %c0_3] : memref<1x32xf32, #tpu.memory_space<vmem>>, vector<1x32xf32>
    %2 = vector.shape_cast %1 : vector<1x32xf32> to vector<1x1x32xf32>
    %3 = vector.broadcast %2 : vector<1x1x32xf32> to vector<2x8x32xf32>
    %4 = arith.mulf %0, %3 : vector<2x8x32xf32>
    %cst = arith.constant dense<0.000000e+00> : vector<2x8xf32>
    %5 = vector.multi_reduction <add>, %4, %cst [2] : vector<2x8x32xf32> to vector<2x8xf32>
    %c0_4 = arith.constant 0 : index
    %c0_5 = arith.constant 0 : index
    %6 = vector.load %arg3[%c0_4, %c0_5] : memref<2x8xf32, #tpu.memory_space<vmem>>, vector<2x8xf32>
    %7 = arith.addf %5, %6 : vector<2x8xf32>
    %cst_6 = arith.constant dense<0xFF800000> : vector<2xf32>
    %8 = vector.multi_reduction <maximumf>, %7, %cst_6 [1] : vector<2x8xf32> to vector<2xf32>
    %9 = vector.shape_cast %8 : vector<2xf32> to vector<2x1xf32>
    %10 = vector.broadcast %9 : vector<2x1xf32> to vector<2x8xf32>
    %11 = arith.subf %7, %10 : vector<2x8xf32>
    %12 = math.exp %11 : vector<2x8xf32>
    %cst_7 = arith.constant dense<0.000000e+00> : vector<2xf32>
    %13 = vector.multi_reduction <add>, %12, %cst_7 [1] : vector<2x8xf32> to vector<2xf32>
    %14 = vector.shape_cast %13 : vector<2xf32> to vector<2x1xf32>
    %15 = vector.broadcast %14 : vector<2x1xf32> to vector<2x8xf32>
    %16 = arith.divf %12, %15 : vector<2x8xf32>
    %17 = vector.shape_cast %16 : vector<2x8xf32> to vector<2x1x8xf32>
    "tpu.trace_start"() <{level = 10 : i32, message = "bqt,bth->bqh"}> : () -> ()
    %cst_8 = arith.constant dense<0.000000e+00> : vector<2x1x32xf32>
    %18 = tpu.matmul %17, %0, %cst_8 {dimension_numbers = #tpu.dot_dimension_numbers<[2], [1], [1], [2], [0, 0, 0, 1, 1, 2], [0], [0]>} : vector<2x1x8xf32>, vector<2x8x32xf32>, vector<2x1x32xf32> -> vector<2x1x32xf32>
    "tpu.trace_stop"() : () -> ()
    %19 = vector.shape_cast %18 : vector<2x1x32xf32> to vector<2x32xf32>
    %c0_9 = arith.constant 0 : index
    %c0_10 = arith.constant 0 : index
    %20 = vector.load %arg4[%c0_9, %c0_10] : memref<2x32xf32, #tpu.memory_space<vmem>>, vector<2x32xf32>
    tpu.vector_store %arg4[%c0_9, %c0_10], %19 {strides = array<i32>} : memref<2x32xf32, #tpu.memory_space<vmem>>, vector<2x32xf32>,
    return
  }
  func.func @transform_0(%arg0: i32) -> (i32, i32) {
    %c0_i32 = arith.constant 0 : i32
    %c0_i32_0 = arith.constant 0 : i32
    %c0_i32_1 = arith.constant 0 : i32
    return %c0_i32, %c0_i32_0 : i32, i32
  }
  func.func @transform_1(%arg0: i32) -> (i32, i32, i32) {
    %c0_i32 = arith.constant 0 : i32
    %c0_i32_0 = arith.constant 0 : i32
    %c0_i32_1 = arith.constant 0 : i32
    return %arg0, %c0_i32, %c0_i32_0 : i32, i32, i32
  }
  func.func @transform_2(%arg0: i32) -> (i32, i32) {
    %c0_i32 = arith.constant 0 : i32
    %c0_i32_0 = arith.constant 0 : i32
    return %arg0, %c0_i32 : i32, i32
  }
  func.func @transform_3(%arg0: i32) -> (i32, i32) {
    %c0_i32 = arith.constant 0 : i32
    %c0_i32_0 = arith.constant 0 : i32
    return %arg0, %c0_i32 : i32, i32
  }
}

</mosaic_0001>

<bundles_post_ra>
// kernel: tpu_custom_call.1
= control target key start
LH: loop header
LB: loop body
LE: loop exit
PB: predicated region body
PF: predicated region fallthrough
CT: control target
= control target key end

     0   :  { %8 = vsyncpa [#allocation3], 0  ;;  %s543_s0 = inlined_call_operand.hbm [shape: f32[1,32], index: 0, kind: input, shape index: {}]   ;;  %s544_s1 = inlined_call_operand.hbm [shape: f32[2,8,32], index: 1, kind: input, shape index: {}]   ;;  %s545_s2 = inlined_call_operand.vmem [shape: f32[2,8], index: 2, kind: input, shape index: {}]   ;;  %s546_s3 = inlined_call_operand.hbm [shape: f32[2,32], index: 3, kind: output, shape index: {}]  }
   0x1   :  { %9 = vsyncpa [#allocation6], 0 }
   0x2   :  { %10 = vsyncpa [#allocation4], 0  ;;  %s448_s12 = smov [#allocation2]   ;;  %s449_s14 = smov [#allocation5]  }
   0x3   :  { %s17_s13 = sshll.u32 %s448_s12, 4  ;;  %s26_s15 = sshll.u32 %s449_s14, 4  ;;  %s18_s13 = int_to_ptr.vmem [resolvable:$true] %s17_s13  ;;  %s476_s15 = int_to_ptr.vmem [resolvable:$true] %s26_s15 }
   0x4   :  { %s376_s18 = scalar_lea.hbm %s543_s0, 16 }
   0x5   :  { %p377_p0 = scmp.ne.s32.totalorder %s543_s0, %s376_s18  ;;  %p380_p1 = scmp.lt.u32.totalorder %s376_s18, %s543_s0 }
   0x7   :  { %p382_p2 = pnand %p380_p1, %p377_p0 }
   0x9   :  { %385 = shalt.err (!%p382_p2)
}
   0xa   :  { %s386_s23 = scalar_lea.vmem %s18_s13, 16  ;;  %s390_s24 = scalar_lea.vmem %s18_s13, 32 }
   0xb   :  { %p387_p3 = scmp.ne.s32.totalorder %s18_s13, %s386_s23  ;;  %p391_p4 = scmp.lt.s32.totalorder %s18_s13, %s18_s13 }
   0xc   :  { %p392_p5 = scmp.lt.s32.totalorder %s390_s24, %s386_s23 }
   0xe   :  { %p393_p6 = por %p392_p5, %p391_p4 }
  0x10   :  { %p394_p7 = pnand %p393_p6, %p387_p3 }
  0x12   :  { %397 = shalt.err (!%p394_p7)
}
  0x13   :  { %20 = dma.hbm_to_vmem [thread:$0]  %s543_s0, 16, %s18_s13, [#allocation3]  }
  0x14   :  { %s398_s29 = scalar_lea.hbm %s544_s1, 256 }
  0x15   :  { %p399_p8 = scmp.ne.s32.totalorder %s544_s1, %s398_s29  ;;  %p402_p9 = scmp.lt.u32.totalorder %s398_s29, %s544_s1 }
  0x17   :  { %p404_p10 = pnand %p402_p9, %p399_p8 }
  0x19   :  { %407 = shalt.err (!%p404_p10)
}
  0x1a   :  { %s408_s7 = scalar_lea.vmem %s476_s15, 256  ;;  %p413_p12 = scmp.lt.s32.totalorder %s476_s15, %s476_s15 }
  0x1b   :  { %p409_p11 = scmp.ne.s32.totalorder %s476_s15, %s408_s7  ;;  %p414_p13 = scmp.lt.s32.totalorder %s408_s7, %s408_s7 }
  0x1d   :  { %p415_p0 = por %p414_p13, %p413_p12 }
  0x1f   :  { %p416_p1 = pnand %p415_p0, %p409_p11 }
  0x21   :  { %419 = shalt.err (!%p416_p1)
}
  0x22   :  { %s450_s0 = smov 128   ;;  %s451_s8 = smov 8  }
  0x23   :  { %32 = dma.hbm_to_vmem [thread:$0]  %s544_s1, 256, %s476_s15, [#allocation6], %s450_s0, %s450_s0, %s451_s8  }
  0x24   :  { %442 = dma.done.wait [#allocation3], 16  }
  0x25   :  { %443 = vsyncadd [#allocation3], 4294967280 }
  0x26   :  { %444 = dma.done.wait [#allocation6], 256  }
  0x27   :  { %445 = vsyncadd [#allocation6], 4294967040  ;;  %v61_v0 = vlaneseq  ;;  %v509_v5 = vld [vmem:[#allocation5] sm:$0xff]  ;;  %v341_v6 = vld [vmem:[#allocation2] ss:$0 sm:$0xff]  ;;  %vm52_vm0 = vcmask 261120  }
  0x28   :  { %v511_v7 = vld [vmem:[#allocation5 + $0x8] sm:$0xff]  ;;  %v50_v9 = vmul.f32 %v341_v6, %v509_v5  ;;  %v59_v11 = vld [vmem:[%s545_s2] sm:$0x3]  ;;  %v452_v16 = vmov 0   ;;  %vm97_vm1 = vcmask 1041409   ;;  %vm100_vm2 = vcmask 58368  }
  0x29   :  { %v62_v1 = vshrl.u32 %v61_v0, 7  ;;  %v88_v2 = vand.u32 127, %v61_v0  ;;  %v51_v10 = vmul.f32 %v341_v6, %v511_v7  ;;  %366 = vset.pattern.permute.xlu0 %v452_v16  ;;  %367 = vset.pattern.permute.xlu1 %v452_v16  ;;  %v453_v50 = vmov 0.0   ;;  %s455_s2 = smov [#allocation7]  }
  0x2a   :  { %v53_v13 = vsel %vm52_vm0, %v50_v9, 0.0  ;;  %353 = vmatprep.subr.mxu1 %v453_v50  ;;  %vm454_vm3 = vmmov 0   ;;  %348 = vmatprep.subr.mxu0 %v453_v50  ;;  %vm165_vm4 = vcmask 64512   ;;  %s331_s12 = sshll.u32 %s455_s2, 4  ;;  %vm323_vm5 = vcmask 254976   ;;  %s332_s12 = int_to_ptr.vmem [resolvable:$true] %s331_s12 }
  0x2b   :  { %v507_v3 = vsub.s32 %v88_v2, %v62_v1  ;;  %v63_v4 = vsub.s32 0, %v62_v1  ;;  %v70_v8 = vsub.s32 1, %v62_v1  ;;  %54 = vadd.xlane.f32.xlu0 %v53_v13  ;;  %v56_v15 = vsel %vm52_vm0, %v51_v10, 0.0  ;;  %354 = vmatpush3.msra.mxu1 %v511_v7  ;;  %s420_s13 = scalar_lea.vmem %s332_s12, 32  ;;  %p425_p3 = scmp.lt.s32.totalorder %s332_s12, %s332_s12 }
  0x2c   :  { %355 = vmatprep.mubr.msk.f32.mxu1 %vm454_vm3, %v453_v50  ;;  %350 = vmatprep.mubr.msk.f32.mxu0 %vm454_vm3, %v453_v50  ;;  %p421_p2 = scmp.ne.s32.totalorder %s332_s12, %s420_s13  ;;  %p426_p4 = scmp.lt.s32.totalorder %s420_s13, %s420_s13 }
  0x2d   :  { %v64_v12 = vrot.slane %v59_v11, %v63_v4  ;;  %v71_v14 = vrot.slane %v59_v11, %v70_v8  ;;  %349 = vmatpush3.msra.mxu0 %v509_v5 }
  0x2e   :  { %p427_p5 = por %p426_p4, %p425_p3 }
  0x2f   :  { %66 = vbcast.lane.b32.xlu1 %v64_v12, 256  ;;  %57 = vadd.xlane.f32.xlu0 %v56_v15 }
  0x30   :  { %p428_p6 = pnand %p427_p5, %p421_p2 }
  0x33   :  { %73 = vbcast.lane.b32.xlu1 %v71_v14, 256 }
  0xa1   :  { %v67_v17 = vpop.permute.xlu1 %66 }
  0xa5   :  { %v74_v20 = vpop.permute.xlu1 %73 }
  0xb8   :  { %v55_v18 = vpop.xlane.xlu0 %54 }
  0xb9   :  { %v77_v19 = vadd.f32 %v67_v17, %v55_v18 }
  0xbb   :  { %82 = vperm.xlu0 %366, %v77_v19  }
  0xbc   :  { %v58_v21 = vpop.xlane.xlu0 %57 }
  0xbd   :  { %v78_v22 = vadd.f32 %v74_v20, %v58_v21 }
  0xbf   :  { %85 = vperm.xlu1 %367, %v78_v22  }
 0x13a   :  { %v83_v23 = vpop.permute.xlu0 %82 }
 0x13b   :  { %v92_v25 = vrot.slane %v83_v23, %v507_v3 }
 0x13e   :  { %v86_v24 = vpop.permute.xlu1 %85 }
 0x13f   :  { %v96_v26 = vrot.slane %v86_v24, %v507_v3 }
 0x141   :  { %v98_v27 = vsel %vm97_vm1, %v96_v26, %v92_v25 }
 0x142   :  { %v101_v28 = vsel %vm100_vm2, %v98_v27, -inf }
 0x143   :  { %102 = vmax.xlane.f32.xlu1 %v101_v28 }
 0x1d0   :  { %v103_v29 = vpop.xlane.xlu1 %102 }
 0x1d1   :  { %v108_v30 = vrot.slane %v103_v29, %v63_v4  ;;  %v112_v31 = vrot.slane %v103_v29, %v70_v8 }
 0x1d3   :  { %v115_v32 = vsub.f32 %v77_v19, %v108_v30  ;;  %v116_v33 = vsub.f32 %v78_v22, %v112_v31 }
 0x1d5   :  { %v117_v34 = vmul.f32 1.442695, %v115_v32  ;;  %v119_v35 = vmul.f32 1.442695, %v116_v33 }
 0x1d7   :  { %368 = vpow2.f32 %v117_v34 }
 0x1d8   :  { %370 = vpow2.f32 %v119_v35 }
 0x1e1   :  { %v369_v36 = vpop.eup %368 }
 0x1e2   :  { %v371_v37 = vpop.eup %370  ;;  %124 = vperm.xlu1 %367, %v369_v36  }
 0x1e3   :  { %127 = vperm.xlu0 %366, %v371_v37  }
 0x261   :  { %v125_v38 = vpop.permute.xlu1 %124 }
 0x262   :  { %v128_v39 = vpop.permute.xlu0 %127  ;;  %v132_v40 = vrot.slane %v125_v38, %v507_v3 }
 0x263   :  { %v136_v41 = vrot.slane %v128_v39, %v507_v3 }
 0x265   :  { %v137_v42 = vsel %vm97_vm1, %v136_v41, %v132_v40 }
 0x266   :  { %v139_v43 = vsel %vm100_vm2, %v137_v42, 0.0 }
 0x267   :  { %140 = vadd.xlane.f32.xlu0 %v139_v43 }
 0x2f4   :  { %v141_v44 = vpop.xlane.xlu0 %140 }
 0x2f5   :  { %v150_v45 = vrot.slane %v141_v44, %v70_v8  ;;  %v146_v46 = vrot.slane %v141_v44, %v63_v4 }
 0x2f7   :  { %372 = vrcp.f32 %v150_v45 }
 0x2f8   :  { %374 = vrcp.f32 %v146_v46 }
 0x301   :  { %v373_v47 = vpop.eup %372 }
 0x302   :  { %v156_v48 = vmul.f32 %v373_v47, %v371_v37  ;;  %v375_v49 = vpop.eup %374 }
 0x303   :  { %v154_v51 = vmul.f32 %v375_v49, %v369_v36 }
 0x304   :  { %240 = vperm.xlu1 %367, %v156_v48  }
 0x308   :  { %159 = vperm.xlu1 %367, %v154_v51  }
 0x383   :  { %v241_v52 = vpop.permute.xlu1 %240 }
 0x384   :  { %v245_v53 = vrot.slane %v241_v52, %v507_v3 }
 0x386   :  { %356 = vmatmul.mubr.msk.f32.vlgmr.msra.gmra.mrb[0].mxu1 %vm165_vm4, %v245_v53 }
 0x387   :  { %v160_v54 = vpop.permute.xlu1 %159 }
 0x388   :  { %v164_v55 = vrot.slane %v160_v54, %v507_v3 }
 0x38a   :  { %351 = vmatmul.mubr.msk.f32.vlgmr.msra.gmra.mrb[0].mxu0 %vm165_vm4, %v164_v55 }
 0x459   :  { %v314_v56 = vpop.f32.mrb[0].mxu1 }
 0x45a   :  { %v357_v57 = vpop.f32.mrb[1].mxu1  ;;  %v320_v58 = vrot.slane %v314_v56, 7 }
 0x45d   :  { %v234_v59 = vpop.f32.mrb[0].mxu0 }
 0x45e   :  { %v321_v60 = vsel %vm97_vm1, %v320_v58, %v234_v59  ;;  %v352_v61 = vpop.f32.mrb[1].mxu0 }
 0x45f   :  { %324 = vst.msk [vmem:[#allocation7] sm:$0x3] %vm323_vm5, %v321_v60 }
 0x460   :  { %431 = shalt.err (!%p428_p6)
}
 0x461   :  { %s432_s16 = scalar_lea.hbm %s546_s3, 32 }
 0x462   :  { %p433_p7 = scmp.ne.s32.totalorder %s546_s3, %s432_s16  ;;  %p436_p8 = scmp.lt.u32.totalorder %s432_s16, %s546_s3 }
 0x464   :  { %p438_p9 = pnand %p436_p8, %p433_p7 }
 0x466   :  { %441 = shalt.err (!%p438_p9)
}
 0x467   :  { %334 = dma.vmem_to_hbm [thread:$0]  %s332_s12, 32, %s546_s3, [#allocation4]  }
 0x468   :  { %446 = dma.done.wait [#allocation4], 32  }
 0x469   :  { %447 = vsyncadd [#allocation4], 4294967264 }
 0x46a   :  { %338 = vsyncpa [#allocation3], 1 }
 0x46b   :  { %339 = vsyncpa [#allocation6], 1 }
 0x46c   :  { %340 = vsyncpa [#allocation4], 1 }

</bundles_post_ra>
